<compile_context>
chip_gen: v5e
topology: v5e:2x2
jax: 0.10.0
libtpu: 0.0.40
codegen_flags: <defaults>
</compile_context>

<pallas_src>
import functools
import math

import jax
import jax.numpy as jnp
from jax.experimental import pallas as pl
from jax.experimental.pallas import tpu as pltpu


def make_pos_embedding(max_len: int, d_model: int) -> jnp.ndarray:
    """Deterministic sin/cos positional embedding, identical to the PyTorch __init__."""
    position = jnp.arange(0, max_len, dtype=jnp.float32)[:, None]                # (L, 1)
    div_term = jnp.exp(
        -jnp.arange(0, d_model, 2, dtype=jnp.float32) * (math.log(10000.0) / d_model)
    )                                                                              # (D/2,)
    pe = jnp.zeros((max_len, d_model), dtype=jnp.float32)
    pe = pe.at[:, 0::2].set(jnp.sin(position * div_term))
    pe = pe.at[:, 1::2].set(jnp.cos(position * div_term))
    return pe                                                                      # (L, D)


def _hash_u32(idx: jnp.ndarray, seed: jnp.ndarray) -> jnp.ndarray:
    """Stateless per-element uint32 hash (murmur3-style finalizer). VPU-only ops."""
    h = idx + seed * jnp.uint32(0x9E3779B9)
    h = h ^ (h >> 16)
    h = h * jnp.uint32(0x7FEB352D)
    h = h ^ (h >> 15)
    h = h * jnp.uint32(0x846CA68B)
    h = h ^ (h >> 16)
    return h


def _pe_dropout_kernel(seed_ref, x_ref, pe_ref, o_ref, *,
                       p: float, training: bool, tile_b: int, tile_c: int, total: int):
    # x_ref/o_ref: (tile_b, tile_c); pe_ref: (1, tile_c) -> broadcast over rows.
    y = x_ref[...] + pe_ref[...]

    if training and p > 0.0:
        # Global element index = (batch_row) * total + flat_col. The dropout mask
        # depends only on (seed, global index), so it is tiling-invariant.
        b0 = pl.program_id(0).astype(jnp.uint32) * jnp.uint32(tile_b)
        c0 = pl.program_id(1).astype(jnp.uint32) * jnp.uint32(tile_c)
        row = jax.lax.broadcasted_iota(jnp.uint32, y.shape, 0) + b0
        col = jax.lax.broadcasted_iota(jnp.uint32, y.shape, 1) + c0
        idx = row * jnp.uint32(total) + col
        bits = _hash_u32(idx, seed_ref[0].astype(jnp.uint32))
        # Integer-threshold compare on the low 24 bits: P(drop) = threshold / 2^24.
        threshold = jnp.uint32(int(round(p * float(1 << 24))))
        keep = (bits & jnp.uint32(0x00FFFFFF)) >= threshold
        scale = jnp.asarray(1.0 / (1.0 - p), dtype=y.dtype)
        y = jnp.where(keep, y * scale, jnp.zeros_like(y))

    o_ref[...] = y.astype(o_ref.dtype)


# ~1 MiB of f32 per block: double-buffered x + out + pe stays ~6 MiB, which is
# comfortably inside the default scoped VMEM on v5e (16 MiB) / v6e / v7x (32 MiB).
_MAX_BLOCK_ELEMS = 256 * 1024


def _pick_col_tile(total: int, max_elems: int) -> int:
    """Largest multiple-of-128 tile that exactly divides `total`, capped at max_elems."""
    if total % 128 != 0 or total <= max_elems:
        # Not lane-alignable (or small): use the full extent (always a legal block).
        # NOTE: for huge S*D not divisible by 128 this means one big block; pad D
        # to a multiple of 128 upstream if that ever matters.
        return total
    n128 = total // 128
    t = min(n128, max(1, max_elems // 128))
    while n128 % t != 0:
        t -= 1
    return t * 128


def _pick_row_tile(b: int, max_rows: int) -> int:
    t = min(b, max(1, max_rows))
    while b % t != 0:
        t -= 1
    return t


def positional_encoding_forward(
    x: jnp.ndarray,              # (B, S, D), batch_first like the PyTorch module
    pos_embedding: jnp.ndarray,  # (max_len, D)
    *,
    dropout_p: float = 0.1,
    training: bool = True,
    seed: int = 0,
) -> jnp.ndarray:
    B, S, D = x.shape
    total = S * D

    # Lane-dense flattened view; pe cast to x.dtype (halves its DMA bytes for bf16).
    x2 = x.reshape(B, total)
    pe2 = pos_embedding[:S, :].astype(x.dtype).reshape(1, total)

    tile_c = _pick_col_tile(total, _MAX_BLOCK_ELEMS)
    tile_b = _pick_row_tile(B, _MAX_BLOCK_ELEMS // tile_c)
    grid = (B // tile_b, total // tile_c)

    seed_arr = jnp.array([seed], dtype=jnp.int32)
    kernel = functools.partial(
        _pe_dropout_kernel, p=float(dropout_p), training=bool(training),
        tile_b=tile_b, tile_c=tile_c, total=total)

    out2 = pl.pallas_call(
        kernel,
        out_shape=jax.ShapeDtypeStruct((B, total), x.dtype),
        grid_spec=pltpu.PrefetchScalarGridSpec(
            num_scalar_prefetch=1,
            grid=grid,
            in_specs=[
                pl.BlockSpec((tile_b, tile_c), lambda b, c, seed: (b, c)),  # x
                pl.BlockSpec((1, tile_c), lambda b, c, seed: (0, c)),       # pe (bcast B)
            ],
            out_specs=pl.BlockSpec((tile_b, tile_c), lambda b, c, seed: (b, c)),
        ),
        compiler_params=pltpu.CompilerParams(
            dimension_semantics=("parallel", "parallel")),
    )(seed_arr, x2, pe2)

    return out2.reshape(B, S, D)


if __name__ == "__main__":
    # Small shapes consistent with the module: batch=2, seq=8, d_model=32, max_len=16.
    B, S, D, MAX_LEN = 2, 8, 32, 16
    key = jax.random.PRNGKey(0)
    x = jax.random.normal(key, (B, S, D), dtype=jnp.float32)
    pos_embedding = make_pos_embedding(MAX_LEN, D)

    # Eval mode: dropout is identity -> exact check against x + pe.
    out_eval = jax.block_until_ready(
        positional_encoding_forward(x, pos_embedding, dropout_p=0.1, training=False))
    expected = x + pos_embedding[None, :S, :]
    assert out_eval.shape == (B, S, D)
    assert jnp.allclose(out_eval, expected, atol=1e-6), "eval-mode mismatch"

    # Train mode: every element is either dropped (0) or kept and scaled by 1/(1-p).
    # TODO(synk): dropout RNG stream is deterministic per (seed, element index) but
    # does not bit-match torch.nn.Dropout's RNG (expected for a TPU kernel).
    p = 0.1
    out_train = jax.block_until_ready(
        positional_encoding_forward(x, pos_embedding, dropout_p=p, training=True, seed=1234))
    assert out_train.shape == (B, S, D)
    scaled = expected / (1.0 - p)
    ok = jnp.isclose(out_train, 0.0, atol=1e-6) | jnp.isclose(out_train, scaled, rtol=1e-5, atol=1e-5)
    assert bool(jnp.all(ok)), "train-mode dropout mismatch"

    print("KERNEL_OK")
</pallas_src>

<mosaic_0001>
module attributes {stable_mosaic.version = 11 : i64} {
  func.func @_pe_dropout_kernel(%arg0: i32, %arg1: i32, %arg2: memref<1xi32, #tpu.memory_space<smem>>, %arg3: memref<2x256xf32, #tpu.memory_space<vmem>>, %arg4: memref<1x256xf32, #tpu.memory_space<vmem>>, %arg5: memref<2x256xf32, #tpu.memory_space<vmem>>) attributes {dimension_semantics = [#tpu.dimension_semantics<parallel>, #tpu.dimension_semantics<parallel>], iteration_bounds = array<i64: 1, 1>, scalar_prefetch = 1 : i64, scratch_operands = 0 : i64, tpu.core_type = #tpu.core_type<tc>, window_params = [{transform_indices = @transform_0, window_bounds = array<i64: 2, 256>}, {transform_indices = @transform_1, window_bounds = array<i64: 1, 256>}, {transform_indices = @transform_2, window_bounds = array<i64: 2, 256>}]} {
    %c0 = arith.constant 0 : index
    %c0_0 = arith.constant 0 : index
    %0 = vector.load %arg3[%c0, %c0_0] : memref<2x256xf32, #tpu.memory_space<vmem>>, vector<2x256xf32>
    %c0_1 = arith.constant 0 : index
    %c0_2 = arith.constant 0 : index
    %1 = vector.load %arg4[%c0_1, %c0_2] : memref<1x256xf32, #tpu.memory_space<vmem>>, vector<1x256xf32>
    %2 = vector.broadcast %1 : vector<1x256xf32> to vector<2x256xf32>
    %3 = arith.addf %0, %2 : vector<2x256xf32>
    %c0_3 = arith.constant 0 : index
    %c0_4 = arith.constant 0 : index
    %4 = vector.load %arg5[%c0_3, %c0_4] : memref<2x256xf32, #tpu.memory_space<vmem>>, vector<2x256xf32>
    tpu.vector_store %arg5[%c0_3, %c0_4], %3 {strides = array<i32>} : memref<2x256xf32, #tpu.memory_space<vmem>>, vector<2x256xf32>,
    return
  }
  func.func @transform_0(%arg0: i32, %arg1: i32, %arg2: memref<1xi32, #tpu.memory_space<smem>>) -> (i32, i32) {
    %c0_i32 = arith.constant 0 : i32
    return %arg0, %arg1 : i32, i32
  }
  func.func @transform_1(%arg0: i32, %arg1: i32, %arg2: memref<1xi32, #tpu.memory_space<smem>>) -> (i32, i32) {
    %c0_i32 = arith.constant 0 : i32
    %c0_i32_0 = arith.constant 0 : i32
    return %c0_i32, %arg1 : i32, i32
  }
  func.func @transform_2(%arg0: i32, %arg1: i32, %arg2: memref<1xi32, #tpu.memory_space<smem>>) -> (i32, i32) {
    %c0_i32 = arith.constant 0 : i32
    return %arg0, %arg1 : i32, i32
  }
}

</mosaic_0001>

<bundles_post_ra>
// kernel: tpu_custom_call.1
= control target key start
LH: loop header
LB: loop body
LE: loop exit
PB: predicated region body
PF: predicated region fallthrough
CT: control target
= control target key end

     0   :  { %9 = vsyncpa [#allocation5], 0  ;;  %s141_s0 = inlined_call_operand.<no memory space> [shape: s32[1], index: 0, kind: input, shape index: {}]   ;;  %s142_s1 = inlined_call_operand.hbm [shape: f32[2,256], index: 1, kind: input, shape index: {}]   ;;  %s143_s2 = inlined_call_operand.vmem [shape: f32[1,256], index: 2, kind: input, shape index: {}]   ;;  %s144_s3 = inlined_call_operand.hbm [shape: f32[2,256], index: 3, kind: output, shape index: {}]  }
   0x1   :  { %10 = vsyncpa [#allocation6], 0  ;;  %s16_s14 = sshll.u32 %s142_s1, 4  ;;  %s110_s15 = smov [#allocation4]   ;;  %s17_s14 = int_to_ptr.hbm [resolvable:$true] %s16_s14 }
   0x2   :  { %s18_s16 = sshll.u32 %s110_s15, 4  ;;  %s19_s16 = int_to_ptr.vmem [resolvable:$true] %s18_s16 }
   0x3   :  { %21 = dma.hbm_to_vmem [thread:$0]  %s17_s14, 64, %s19_s16, [#allocation5]  }
   0x4   :  { %106 = dma.done.wait [#allocation5], 64  }
   0x5   :  { %107 = vsyncadd [#allocation5], 4294967232  ;;  %v29_v0 = vld [vmem:[%s143_s2] sm:$0x3]  ;;  %vm34_vm0 = vcmask 1041408   ;;  %s111_s18 = smov [#allocation7]  }
   0x6   :  { %v31_v1 = vperm.slane %v29_v0, 0  ;;  %v32_v2 = vperm.slane %v29_v0, 1  ;;  %v28_v3 = vld [vmem:[#allocation4] sm:$0xf]  ;;  %s44_s19 = sshll.u32 %s111_s18, 4  ;;  %s46_s21 = sshll.u32 %s144_s3, 4  ;;  %s45_s19 = int_to_ptr.vmem [resolvable:$true] %s44_s19  ;;  %s47_s21 = int_to_ptr.hbm [resolvable:$true] %s46_s21 }
   0x8   :  { %v33_v4 = vrot.slane %v32_v2, 6 }
   0xa   :  { %v35_v5 = vsel %vm34_vm0, %v31_v1, %v33_v4 }
   0xb   :  { %v37_v6 = vadd.f32 %v35_v5, %v28_v3 }
   0xd   :  { %38 = vst [vmem:[#allocation7] sm:$0xf] %v37_v6 }
   0xe   :  { %49 = dma.vmem_to_hbm [thread:$0]  %s45_s19, 64, %s47_s21, [#allocation6]  }
   0xf   :  { %108 = dma.done.wait [#allocation6], 64  }
  0x10   :  { %109 = vsyncadd [#allocation6], 4294967232 }
  0x11   :  { %54 = vsyncpa [#allocation5], 1 }
  0x12   :  { %55 = vsyncpa [#allocation6], 1 }

</bundles_post_ra>
